<compile_context>
chip_gen: v7x
topology: tpu7x:2x2x1
jax: 0.10.0
libtpu: 0.0.40
codegen_flags: <defaults>
</compile_context>

<pallas_src>
import jax
import jax.numpy as jnp
from jax.experimental import pallas as pl
from jax.experimental.pallas import tpu as pltpu


def mlp_kernel(x_ref, w0_ref, wh_ref, wu_ref, bu_ref, o_ref, h_ref):
    """grid = (batch_tiles, L-1).  h_ref: persistent bf16 activation scratch."""
    l = pl.program_id(1)
    n_l = pl.num_programs(1)

    # First layer: ReLU(x @ W0), only at the first layer step of each batch tile.
    @pl.when(l == 0)
    def _():
        h0 = jnp.dot(x_ref[...], w0_ref[...], preferred_element_type=jnp.float32)
        h_ref[...] = jnp.maximum(h0, 0.0).astype(h_ref.dtype)

    # Hidden layer l: ReLU(h @ Wh[l]); Wh[l] is streamed in per grid step.
    h1 = jnp.dot(h_ref[...], wh_ref[...], preferred_element_type=jnp.float32)
    h_ref[...] = jnp.maximum(h1, 0.0).astype(h_ref.dtype)

    # Output layer: h @ Wu + b, at the last layer step (lane-dense padded width).
    @pl.when(l == n_l - 1)
    def _():
        y = jnp.dot(h_ref[...], wu_ref[...], preferred_element_type=jnp.float32)
        o_ref[...] = (y + bu_ref[...]).astype(o_ref.dtype)


def _pick_tb(B):
    for cand in (256, 128, 64, 32, 16):
        if B % cand == 0:
            return cand
    return B


def net_forward(x, w0, wh, wu, bu, *, tb=None):
    B, in_dim = x.shape
    hidden = w0.shape[1]
    Lm1 = wh.shape[0]
    out_dim = wu.shape[1]
    assert Lm1 >= 1, "need L >= 2 (at least one hidden layer)"
    if tb is None:
        tb = _pick_tb(B)
    assert B % tb == 0 and tb % 16 == 0, (B, tb)
    nb = B // tb

    # Lane-dense output: pad out_dim up to a multiple of 128 with zero columns.
    out_pad = ((out_dim + 127) // 128) * 128
    wu_p = jnp.pad(wu, ((0, 0), (0, out_pad - out_dim)))
    bu_p = jnp.pad(bu.reshape(1, -1), ((0, 0), (0, out_pad - out_dim)))

    # bf16 operands at the call boundary; f32 accumulation inside the kernel.
    x_b = x.astype(jnp.bfloat16)
    w0_b = w0.astype(jnp.bfloat16)
    wh_b = wh.astype(jnp.bfloat16)
    wu_b = wu_p.astype(jnp.bfloat16)
    bu_f = bu_p.astype(jnp.float32)

    flops = 2 * B * (in_dim * hidden + Lm1 * hidden * hidden + hidden * out_pad)
    bytes_accessed = (
        x_b.size * 2 + w0_b.size * 2 + wh_b.size * 2 + wu_b.size * 2
        + bu_f.size * 4 + B * out_pad * 4
    )

    out = pl.pallas_call(
        mlp_kernel,
        out_shape=jax.ShapeDtypeStruct((B, out_pad), jnp.float32),
        grid_spec=pltpu.PrefetchScalarGridSpec(
            num_scalar_prefetch=0,
            grid=(nb, Lm1),  # batch tiles (parallel) x hidden layers (arbitrary)
            in_specs=[
                pl.BlockSpec((tb, in_dim), lambda b, l: (b, 0)),
                pl.BlockSpec((in_dim, hidden), lambda b, l: (0, 0)),
                # stream one hidden layer's weights per grid step (squeezed dim 0)
                pl.BlockSpec((None, hidden, hidden), lambda b, l: (l, 0, 0)),
                pl.BlockSpec((hidden, out_pad), lambda b, l: (0, 0)),
                pl.BlockSpec((1, out_pad), lambda b, l: (0, 0)),
            ],
            out_specs=pl.BlockSpec((tb, out_pad), lambda b, l: (b, 0)),
            scratch_shapes=[pltpu.VMEM((tb, hidden), jnp.bfloat16)],
        ),
        compiler_params=pltpu.CompilerParams(
            dimension_semantics=("parallel", "arbitrary"),
            vmem_limit_bytes=48 * 1024 * 1024,
        ),
        cost_estimate=pl.CostEstimate(
            flops=flops, transcendentals=0, bytes_accessed=bytes_accessed
        ),
    )(x_b, w0_b, wh_b, wu_b, bu_f)
    return out[:, :out_dim]


def make_params(key, in_dim, hidden_dim, out_dim, L):
    """Deterministic parameter init (Kaiming-uniform-ish, like nn.Linear default)."""
    ks = jax.random.split(key, L + 2)

    def lin_w(k, fan_in, fan_out):
        bound = 1.0 / jnp.sqrt(fan_in)
        # stored as [in, out] (transpose of PyTorch's [out, in])
        return jax.random.uniform(k, (fan_in, fan_out), jnp.float32, -bound, bound)

    w0 = lin_w(ks[0], in_dim, hidden_dim)
    wh = jnp.stack(
        [lin_w(ks[1 + i], hidden_dim, hidden_dim) for i in range(L - 1)], axis=0
    )
    wu = lin_w(ks[L], hidden_dim, out_dim)
    bu = jax.random.uniform(
        ks[L + 1], (1, out_dim), jnp.float32,
        -1.0 / jnp.sqrt(hidden_dim), 1.0 / jnp.sqrt(hidden_dim),
    )
    return w0, wh, wu, bu


def reference_forward(x, w0, wh, wu, bu):
    """Pure-f32 reference matching the PyTorch module."""
    h = jnp.maximum(x @ w0, 0.0)
    for i in range(wh.shape[0]):
        h = jnp.maximum(h @ wh[i], 0.0)
    return h @ wu + bu


if __name__ == "__main__":
    # Small shapes consistent with the module's constructor (hidden=128, out=64).
    B, in_dim, hidden_dim, out_dim, L = 128, 256, 128, 64, 6

    key = jax.random.PRNGKey(0)
    kx, kp = jax.random.split(key)
    x = jax.random.normal(kx, (B, in_dim), jnp.float32)
    w0, wh, wu, bu = make_params(kp, in_dim, hidden_dim, out_dim, L)

    # tb=64 -> 2 batch tiles so both v7x TensorCores get grid work.
    out = net_forward(x, w0, wh, wu, bu, tb=64)
    out = jax.block_until_ready(out)

    ref = reference_forward(x, w0, wh, wu, bu)
    assert out.shape == (B, out_dim)
    # Loose tolerance accounts for bf16 operands / bf16 inter-layer activations.
    assert jnp.allclose(out, ref, atol=5e-2, rtol=5e-2), float(
        jnp.max(jnp.abs(out - ref))
    )

    print("KERNEL_OK")
</pallas_src>

<mosaic_0001>
module attributes {stable_mosaic.version = 11 : i64} {
  func.func @mlp_kernel(%arg0: i32, %arg1: i32, %arg2: memref<64x256xbf16, #tpu.memory_space<vmem>>, %arg3: memref<256x128xbf16, #tpu.memory_space<vmem>>, %arg4: memref<1x128x128xbf16, #tpu.memory_space<vmem>>, %arg5: memref<128x128xbf16, #tpu.memory_space<vmem>>, %arg6: memref<1x128xf32, #tpu.memory_space<vmem>>, %arg7: memref<64x128xf32, #tpu.memory_space<vmem>>, %arg8: memref<64x128xbf16, #tpu.memory_space<vmem>>) attributes {dimension_semantics = [#tpu.dimension_semantics<parallel>, #tpu.dimension_semantics<arbitrary>], iteration_bounds = array<i64: 2, 5>, scalar_prefetch = 0 : i64, scratch_operands = 1 : i64, tpu.core_type = #tpu.core_type<tc>, window_params = [{transform_indices = @transform_0, window_bounds = array<i64: 64, 256>}, {pipeline_mode = #tpu.pipeline_mode<synchronous>, transform_indices = @transform_1, window_bounds = array<i64: 256, 128>}, {transform_indices = @transform_2, window_bounds = array<i64: 1, 128, 128>}, {pipeline_mode = #tpu.pipeline_mode<synchronous>, transform_indices = @transform_3, window_bounds = array<i64: 128, 128>}, {pipeline_mode = #tpu.pipeline_mode<synchronous>, transform_indices = @transform_4, window_bounds = array<i64: 1, 128>}, {transform_indices = @transform_5, window_bounds = array<i64: 64, 128>}]} {
    %c0_i32 = arith.constant 0 : i32
    %0 = arith.cmpi eq, %arg1, %c0_i32 : i32
    %1 = arith.extui %0 : i1 to i32
    %c0_i32_0 = arith.constant 0 : i32
    %2 = arith.cmpi ne, %1, %c0_i32_0 : i32
    scf.if %2 {
      %c0_9 = arith.constant 0 : index
      %c0_10 = arith.constant 0 : index
      %14 = vector.load %arg2[%c0_9, %c0_10] : memref<64x256xbf16, #tpu.memory_space<vmem>>, vector<64x256xbf16>
      %c0_11 = arith.constant 0 : index
      %c0_12 = arith.constant 0 : index
      %15 = vector.load %arg3[%c0_11, %c0_12] : memref<256x128xbf16, #tpu.memory_space<vmem>>, vector<256x128xbf16>
      %cst_13 = arith.constant dense<0.000000e+00> : vector<64x128xf32>
      %16 = tpu.matmul %14, %15, %cst_13 {dimension_numbers = #tpu.dot_dimension_numbers<[1], [0], [0], [1], [0, 0, 1, 1], [], []>} : vector<64x256xbf16>, vector<256x128xbf16>, vector<64x128xf32> -> vector<64x128xf32>
      %cst_14 = arith.constant 0.000000e+00 : f32
      %17 = vector.broadcast %cst_14 : f32 to vector<64x128xf32>
      %18 = arith.maximumf %16, %17 : vector<64x128xf32>
      %19 = arith.truncf %18 : vector<64x128xf32> to vector<64x128xbf16>
      %c0_15 = arith.constant 0 : index
      %c0_16 = arith.constant 0 : index
      %20 = vector.load %arg8[%c0_15, %c0_16] : memref<64x128xbf16, #tpu.memory_space<vmem>>, vector<64x128xbf16>
      tpu.vector_store %arg8[%c0_15, %c0_16], %19 {strides = array<i32>} : memref<64x128xbf16, #tpu.memory_space<vmem>>, vector<64x128xbf16>,
    } else {
    }
    %c0 = arith.constant 0 : index
    %c0_1 = arith.constant 0 : index
    %3 = vector.load %arg8[%c0, %c0_1] : memref<64x128xbf16, #tpu.memory_space<vmem>>, vector<64x128xbf16>
    %c0_2 = arith.constant 0 : index
    %c0_3 = arith.constant 0 : index
    %c0_4 = arith.constant 0 : index
    %4 = vector.load %arg4[%c0_2, %c0_3, %c0_4] : memref<1x128x128xbf16, #tpu.memory_space<vmem>>, vector<1x128x128xbf16>
    %5 = vector.shape_cast %4 : vector<1x128x128xbf16> to vector<128x128xbf16>
    %cst = arith.constant dense<0.000000e+00> : vector<64x128xf32>
    %6 = tpu.matmul %3, %5, %cst {dimension_numbers = #tpu.dot_dimension_numbers<[1], [0], [0], [1], [0, 0, 1, 1], [], []>} : vector<64x128xbf16>, vector<128x128xbf16>, vector<64x128xf32> -> vector<64x128xf32>
    %cst_5 = arith.constant 0.000000e+00 : f32
    %7 = vector.broadcast %cst_5 : f32 to vector<64x128xf32>
    %8 = arith.maximumf %6, %7 : vector<64x128xf32>
    %9 = arith.truncf %8 : vector<64x128xf32> to vector<64x128xbf16>
    %c0_6 = arith.constant 0 : index
    %c0_7 = arith.constant 0 : index
    %10 = vector.load %arg8[%c0_6, %c0_7] : memref<64x128xbf16, #tpu.memory_space<vmem>>, vector<64x128xbf16>
    tpu.vector_store %arg8[%c0_6, %c0_7], %9 {strides = array<i32>} : memref<64x128xbf16, #tpu.memory_space<vmem>>, vector<64x128xbf16>,
    %c4_i32 = arith.constant 4 : i32
    %11 = arith.cmpi eq, %arg1, %c4_i32 : i32
    %12 = arith.extui %11 : i1 to i32
    %c0_i32_8 = arith.constant 0 : i32
    %13 = arith.cmpi ne, %12, %c0_i32_8 : i32
    scf.if %13 {
      %c0_9 = arith.constant 0 : index
      %c0_10 = arith.constant 0 : index
      %14 = vector.load %arg8[%c0_9, %c0_10] : memref<64x128xbf16, #tpu.memory_space<vmem>>, vector<64x128xbf16>
      %c0_11 = arith.constant 0 : index
      %c0_12 = arith.constant 0 : index
      %15 = vector.load %arg5[%c0_11, %c0_12] : memref<128x128xbf16, #tpu.memory_space<vmem>>, vector<128x128xbf16>
      %cst_13 = arith.constant dense<0.000000e+00> : vector<64x128xf32>
      %16 = tpu.matmul %14, %15, %cst_13 {dimension_numbers = #tpu.dot_dimension_numbers<[1], [0], [0], [1], [0, 0, 1, 1], [], []>} : vector<64x128xbf16>, vector<128x128xbf16>, vector<64x128xf32> -> vector<64x128xf32>
      %c0_14 = arith.constant 0 : index
      %c0_15 = arith.constant 0 : index
      %17 = vector.load %arg6[%c0_14, %c0_15] : memref<1x128xf32, #tpu.memory_space<vmem>>, vector<1x128xf32>
      %18 = vector.broadcast %17 : vector<1x128xf32> to vector<64x128xf32>
      %19 = arith.addf %16, %18 : vector<64x128xf32>
      %c0_16 = arith.constant 0 : index
      %c0_17 = arith.constant 0 : index
      %20 = vector.load %arg7[%c0_16, %c0_17] : memref<64x128xf32, #tpu.memory_space<vmem>>, vector<64x128xf32>
      tpu.vector_store %arg7[%c0_16, %c0_17], %19 {strides = array<i32>} : memref<64x128xf32, #tpu.memory_space<vmem>>, vector<64x128xf32>,
    } else {
    }
    return
  }
  func.func @transform_0(%arg0: i32, %arg1: i32) -> (i32, i32) {
    %c0_i32 = arith.constant 0 : i32
    %c0_i32_0 = arith.constant 0 : i32
    return %arg0, %c0_i32 : i32, i32
  }
  func.func @transform_1(%arg0: i32, %arg1: i32) -> (i32, i32) {
    %c0_i32 = arith.constant 0 : i32
    %c0_i32_0 = arith.constant 0 : i32
    %c0_i32_1 = arith.constant 0 : i32
    return %c0_i32, %c0_i32_0 : i32, i32
  }
  func.func @transform_2(%arg0: i32, %arg1: i32) -> (i32, i32, i32) {
    %c0_i32 = arith.constant 0 : i32
    %c0_i32_0 = arith.constant 0 : i32
    %c0_i32_1 = arith.constant 0 : i32
    return %arg1, %c0_i32, %c0_i32_0 : i32, i32, i32
  }
  func.func @transform_3(%arg0: i32, %arg1: i32) -> (i32, i32) {
    %c0_i32 = arith.constant 0 : i32
    %c0_i32_0 = arith.constant 0 : i32
    %c0_i32_1 = arith.constant 0 : i32
    return %c0_i32, %c0_i32_0 : i32, i32
  }
  func.func @transform_4(%arg0: i32, %arg1: i32) -> (i32, i32) {
    %c0_i32 = arith.constant 0 : i32
    %c0_i32_0 = arith.constant 0 : i32
    %c0_i32_1 = arith.constant 0 : i32
    return %c0_i32, %c0_i32_0 : i32, i32
  }
  func.func @transform_5(%arg0: i32, %arg1: i32) -> (i32, i32) {
    %c0_i32 = arith.constant 0 : i32
    %c0_i32_0 = arith.constant 0 : i32
    return %arg0, %c0_i32 : i32, i32
  }
}

</mosaic_0001>

<bundles_post_ra>
// kernel: tpu_custom_call.1
= control target key start
LH: loop header
LB: loop body
LE: loop exit
PB: predicated region body
PF: predicated region fallthrough
CT: control target
= control target key end

     0   :  { %s2123_s0 = inlined_call_operand.hbm [shape: bf16[128,256], index: 0, kind: input, shape index: {}]   ;;  %s2124_s1 = inlined_call_operand.hbm [shape: bf16[256,128], index: 1, kind: input, shape index: {}]   ;;  %s2125_s2 = inlined_call_operand.hbm [shape: bf16[5,128,128], index: 2, kind: input, shape index: {}]   ;;  %s2126_s3 = inlined_call_operand.hbm [shape: bf16[128,128], index: 3, kind: input, shape index: {}]   ;;  %s2127_s4 = inlined_call_operand.vmem [shape: f32[1,128], index: 4, kind: input, shape index: {}]   ;;  %s2128_s5 = inlined_call_operand.hbm [shape: f32[128,128], index: 5, kind: output, shape index: {}]  }
   0x1   :  { %2146 = sst [smem:[#allocation20_spill]] %s2123_s0 }
   0x2   :  { %2147 = sst [smem:[#allocation21_spill]] %s2124_s1 }
   0x3   :  { %2148 = sst [smem:[#allocation22_spill]] %s2126_s3 }
   0x4   :  { %2149 = sst [smem:[#allocation23_spill]] %s2128_s5 }
   0x5   :  { %10 = vsyncpa [#allocation4], 0 }
   0x6   :  { %12 = vsyncpa [#allocation4 + $0x1], 0 }
   0x7   :  { %13 = vsyncpa [#allocation7], 0 }
   0x8   :  { %14 = vsyncpa [#allocation5], 0 }
   0x9   :  { %16 = vsyncpa [#allocation5 + $0x1], 0  ;;  %s1726_s18 = smov 0   ;;  %s1728_s19 = smov 0  }
   0xa   :  { %s1730_s20 = smov 0   ;;  %s1732_s21 = smov 0  }
   0xb   :  { %s1734_s22 = smov 0   ;;  %s1736_s23 = smov 0  }
   0xc   :  { %s1738_s24 = smov 0   ;;  %s1740_s25 = smov 0  }
   0xd   :  { %s1742_s26 = smov 0   ;;  %s1744_s27 = smov 0  }
   0xe   :  { %s1746_s28 = smov 0  }
   0xf LB: > { %2150 = sst [smem:[#allocation16_spill]] %s1655_s21  ;;  %s1780_s29 = sadd.s32 4294967295, %s1683_s28   ;;  %s1683_s28 = sphi %s1746_s28, %s22_s28   ;;  %s1679_s27 = sphi %s1744_s27, %s2198_s27   ;;  %s1675_s26 = sphi %s1742_s26, %s2197_s26   ;;  %s1671_s25 = sphi %s1740_s25, %s2196_s25   ;;  %s1667_s24 = sphi %s1738_s24, %s2195_s24   ;;  %s1663_s23 = sphi %s1736_s23, %s2194_s23   ;;  %s1659_s22 = sphi %s1734_s22, %s2193_s22   ;;  %s1655_s21 = sphi %s1732_s21, %s2192_s21   ;;  %s1651_s20 = sphi %s1730_s20, %s2191_s20   ;;  %s1647_s19 = sphi %s1728_s19, %s2190_s19   ;;  %s1643_s18 = sphi %s1726_s18, %s2189_s18  }
  0x10   : > { %2151 = sst [smem:[#allocation17_spill]] %s1671_s25  ;;  %s1025_s30 = sadd.s32 4294967294, %s1683_s28  }
  0x11   : > { %p54_p0 = scmp.ne.s32.totalorder %s1659_s22, %s1655_s21  ;;  %p2129_p1 = scmp.eq.s32.totalorder %s1780_s29, 0 }
  0x12   : > { %p101_p2 = scmp.ne.s32.totalorder %s1647_s19, %s1643_s18  ;;  %p173_p5 = scmp.eq.s32.totalorder %s1025_s30, 9 }
  0x13   : > { %p1790_p4 = por %p2129_p1, %p54_p0  ;;  %p1026_p7 = scmp.ge.s32.totalorder %s1683_s28, 1 }
  0x14   : > { %p1796_p6 = por %p101_p2, %p2129_p1  ;;  %p1801_p8 = por %p173_p5, %p54_p0 }
  0x15   : > { %s2152_s6 = scalar_select %p1790_p4, 1, 0 }
  0x16   : > { %s2153_s7 = scalar_select %p1796_p6, 1, 0 }
  0x17   : > { %s2154_s8 = scalar_select %p1801_p8, 1, 0 }
  0x18   : > { %p180_p9 = scmp.lt.s32.totalorder %s1683_s28, 11  ;;  %s1685_s10 = smov [#allocation6]  }
  0x19   : > { %2155 = sst [smem:[#allocation18_spill]] %s2154_s8  ;;  %s192_s11 = sshll.u32 %s1685_s10, 4  ;;  %s193_s11 = int_to_ptr.vmem [resolvable:$true] %s192_s11 }
  0x1a   : > { %p1806_p10 = pnand %p1026_p7, %p180_p9  ;;  %s2158_s1 = sld [smem:[#allocation21_spill]] }
  0x1c   : > { %s2156_s9 = scalar_select %p1806_p10, 1, 0 }
  0x1d   : > { %p1269_p11 = pneg %p1806_p10 }
  0x1f   : > { %p1814_p12 = pnand %p1269_p11, %p2129_p1 }
  0x20   : > { %s1433_s16 = scalar_lea.hbm %s2158_s1, 2048 }
  0x21   : > { %p1434_p13 = scmp.ne.s32.totalorder %s2158_s1, %s1433_s16  ;;  %p2142_p0 = pneg %p1814_p12 }
  0x22   : > { %p1440_p7 = scmp.lt.u32.totalorder %s1433_s16, %s2158_s1 }
  0x23   : > { %p1436_p2 = pnand %p2142_p0, %p1434_p13 }
  0x25   : > { %p1437_p5 = pneg %p1436_p2 }
  0x27   : > { %p1442_p9 = pnand %p1440_p7, %p1437_p5 }
  0x29   : > { %1445 = shalt.err (!%p1442_p9)
}
  0x2a   : > { %s1446_s13 = scalar_lea.vmem %s193_s11, 2048  ;;  %p1454_p8 = scmp.lt.s32.totalorder %s193_s11, %s193_s11 }
  0x2b   : > { %p1447_p11 = scmp.ne.s32.totalorder %s193_s11, %s1446_s13  ;;  %p1455_p6 = scmp.lt.s32.totalorder %s1446_s13, %s1446_s13 }
  0x2d   : > { %p1449_p1 = pnand %p1447_p11, %p2142_p0  ;;  %p1456_p4 = por %p1455_p6, %p1454_p8 }
  0x2f   : > { %p1450_p3 = pneg %p1449_p1 }
  0x31   : > { %p1457_p10 = pnand %p1456_p4, %p1450_p3 }
  0x33   : > { %1460 = shalt.err (!%p1457_p10)
}
  0x34   : > { %s2136_s14 = smov 64   ;;  %s2138_s15 = smov 4  }
  0x35   : > { %1272 = dma.hbm_to_vmem [thread:$0]  (!%p1814_p12), %s2158_s1, 2048, %s193_s11, [#allocation7], %s2136_s14, %s2136_s14, %s2138_s15  }
  0x36   : > { %p48_p1 = scmp.ne.s32.totalorder %s1663_s23, %s1659_s22  ;;  %p2141_p3 = scmp.eq.s32.totalorder %s1683_s28, 0 }
  0x37   : > { %p2140_p4 = scmp.lt.s32.totalorder %s1683_s28, 10  ;;  %p2159_p6 = scmp.eq.s32.totalorder %s1780_s29, 9 }
  0x38   : > { %s222_s30 = sand.u32 1, %s1683_s28   ;;  %p50_p10 = por %p2141_p3, %p48_p1 }
  0x39   : > { %p1851_p8 = por %p2159_p6, %p48_p1  ;;  %s224_s10 = sand.u32 1, %s1663_s23  }
  0x3a   : > { %s1092_s8 = sshll.u32 %s1679_s27, 10  ;;  %s1030_s21 = sshll.u32 %s224_s10, 6 }
  0x3b   : > { %s2160_s18 = scalar_select %p1851_p8, 1, 0 }
  0x3c   : > { %s2162_s0 = sld [smem:[#allocation20_spill]]  ;;  %p1867_p13 = pnand %p2140_p4, %p50_p10 }
  0x3d   : > { %2161 = sst [smem:[#allocation19_spill]] %s2160_s18  ;;  %s226_s16 = scalar_lea.vmem [#allocation3], %s1030_s21 }
  0x3e   : > { %s234_s17 = sshll.u32 %s226_s16, 4  ;;  %s1873_s10 = scalar_lea.sflag [#allocation4], %s222_s30  ;;  %s1871_s17 = int_to_ptr.vmem [resolvable:$true] %s234_s17 }
  0x3f   : > { %p1463_p5 = pneg %p1867_p13 }
  0x42   : > { %s1863_s13 = scalar_lea.hbm %s2162_s0, %s1092_s8  ;;  %s1466_s14 = scalar_lea.hbm %s2162_s0, 2048 }
  0x43   : > { %s1461_s5 = scalar_lea.hbm %s1863_s13, 1024  ;;  %p1467_p11 = scmp.lt.u32.totalorder %s1863_s13, %s2162_s0 }
  0x44   : > { %p1462_p2 = scmp.ne.s32.totalorder %s1863_s13, %s1461_s5  ;;  %p1468_p1 = scmp.lt.u32.totalorder %s1466_s14, %s1461_s5 }
  0x45   : > { %p1470_p10 = scmp.lt.u32.totalorder %s1461_s5, %s1863_s13 }
  0x46   : > { %p1464_p7 = pnand %p1463_p5, %p1462_p2  ;;  %p1469_p6 = por %p1468_p1, %p1467_p11 }
  0x48   : > { %p1465_p9 = pneg %p1464_p7  ;;  %p1471_p4 = por %p1470_p10, %p1469_p6 }
  0x4a   : > { %p1472_p3 = pnand %p1471_p4, %p1465_p9 }
  0x4c   : > { %1475 = shalt.err (!%p1472_p3)
}
  0x4d   : > { %s1476_s21 = scalar_lea.vmem %s1871_s17, 1024  ;;  %s1688_s30 = smov [#allocation3]  }
  0x4e   : > { %p1477_p2 = scmp.ne.s32.totalorder %s1871_s17, %s1476_s21  ;;  %s1481_s16 = sshll.u32 %s1688_s30, 4  ;;  %s1482_s16 = int_to_ptr.vmem [resolvable:$false] %s1481_s16 }
  0x4f   : > { %s1483_s1 = scalar_lea.vmem %s1482_s16, 2048  ;;  %p1484_p8 = scmp.lt.s32.totalorder %s1871_s17, %s1482_s16 }
  0x50   : > { %p1479_p7 = pnand %p1477_p2, %p1463_p5  ;;  %p1485_p11 = scmp.lt.s32.totalorder %s1483_s1, %s1476_s21 }
  0x52   : > { %p1480_p0 = pneg %p1479_p7  ;;  %p1486_p1 = por %p1485_p11, %p1484_p8 }
  0x54   : > { %p1487_p6 = pnand %p1486_p1, %p1480_p0 }
  0x56   : > { %1490 = shalt.err (!%p1487_p6)
}
  0x57   : > { %s1689_s14 = smov 128   ;;  %s1690_s15 = smov 8  }
  0x58   : > { %1279 = dma.hbm_to_vmem [thread:$0]  (!%p1867_p13), %s1863_s13, 1024, %s1871_s17, %s1873_s10, %s1689_s14, %s1689_s14, %s1690_s15  }
  0x59   : > { %s1691_s5 = smov [#allocation9]   ;;  %s2164_s3 = sld [smem:[#allocation22_spill]] }
  0x5a   : > { %s205_s25 = sshll.u32 %s1691_s5, 4  ;;  %p2165_p3 = pneg %p1814_p12  ;;  %s206_s25 = int_to_ptr.vmem [resolvable:$true] %s205_s25 }
  0x5f   : > { %s1491_s16 = scalar_lea.hbm %s2164_s3, 1024 }
  0x60   : > { %p1492_p0 = scmp.ne.s32.totalorder %s2164_s3, %s1491_s16  ;;  %p1498_p5 = scmp.lt.u32.totalorder %s1491_s16, %s2164_s3 }
  0x62   : > { %p1494_p4 = pnand %p1492_p0, %p2165_p3 }
  0x64   : > { %p1495_p8 = pneg %p1494_p4 }
  0x66   : > { %p1500_p13 = pnand %p1498_p5, %p1495_p8 }
  0x68   : > { %1503 = shalt.err (!%p1500_p13)
}
  0x69   : > { %s1504_s17 = scalar_lea.vmem %s206_s25, 1024  ;;  %p2166_p10 = pmov %p2165_p3 }
  0x6a   : > { %p1505_p9 = scmp.ne.s32.totalorder %s206_s25, %s1504_s17  ;;  %p1512_p11 = scmp.lt.s32.totalorder %s206_s25, %s206_s25 }
  0x6b   : > { %p1513_p1 = scmp.lt.s32.totalorder %s1504_s17, %s1504_s17 }
  0x6c   : > { %p1507_p2 = pnand %p1505_p9, %p2166_p10 }
  0x6d   : > { %p1514_p6 = por %p1513_p1, %p1512_p11 }
  0x6e   : > { %p1508_p7 = pneg %p1507_p2 }
  0x70   : > { %p1515_p0 = pnand %p1514_p6, %p1508_p7 }
  0x72   : > { %1518 = shalt.err (!%p1515_p0)
}
  0x73   : > { %s2167_s13 = smov 4   ;;  %s2168_s11 = smov 64  }
  0x74   : > { %1275 = dma.hbm_to_vmem [thread:$0]  (!%p1814_p12), %s2164_s3, 1024, %s206_s25, [#allocation7], %s2168_s11, %s2168_s11, %s2167_s13  }
  0x75   : > { %s31_s14 = sadd.s32 1, %s1675_s26  ;;  %s88_s12 = sadd.s32 1, %s1651_s20 }
  0x76   : > { %p32_p3 = scmp.ge.s32.totalorder %s31_s14, 5  ;;  %p95_p4 = scmp.ne.s32.totalorder %s1651_s20, %s1647_s19 }
  0x77   : > { %s246_s15 = sand.u32 1, %s1651_s20   ;;  %s1093_s5 = sshll.u32 %s1675_s26, 10 }
  0x78   : > { %s2200_s14 = smov (%p32_p3, %s31_s14), 0  ;;  %s2169_s8 = sadd.s32 1, %s1679_s27 }
  0x79   : > { %s2202_s8 = smov (!%p32_p3, %s2169_s8), %s1679_s27  ;;  %s85_s30 = ssub.s32 %s1675_s26, %s2200_s14 }
  0x7a   : > { %p2170_p8 = scmp.eq.s32.totalorder %s1683_s28, 0  ;;  %p36_p12 = scmp.ge.s32.totalorder %s2202_s8, 2 }
  0x7b   : > { %p86_p13 = scmp.eq.s32.totalorder %s85_s30, 0  ;;  %s1034_s25 = sshll.u32 %s246_s15, 6 }
  0x7c   : > { %p97_p5 = por %p95_p4, %p2170_p8  ;;  %s1942_s1 = scalar_lea.hbm %s2125_s2, %s1093_s5 }
  0x7d   : > { %s2204_s8 = smov (%p36_p12, %s2202_s8), 0  ;;  %s248_s18 = scalar_lea.vmem [#allocation8], %s1034_s25 }
  0x7e   : > { %s1947_s17 = scalar_select %p86_p13, %s1651_s20, %s88_s12  }
  0x7f   : > { %s38_s0 = ssub.s32 %s1679_s27, %s2204_s8  ;;  %s255_s3 = sshll.u32 %s248_s18, 4  ;;  %s1951_s3 = int_to_ptr.vmem [resolvable:$true] %s255_s3 }
  0x80   : > { %p39_p9 = scmp.eq.s32.totalorder %s38_s0, 0  ;;  %p2171_p10 = scmp.lt.s32.totalorder %s1683_s28, 10 }
  0x81   : > { %s2173_s5 = sadd.s32 1, %s1663_s23  ;;  %s1519_s16 = scalar_lea.hbm %s1942_s1, 1024 }
  0x82   : > { %p1955_p2 = pnand %p2171_p10, %p97_p5  ;;  %p1520_p7 = scmp.ne.s32.totalorder %s1942_s1, %s1519_s16 }
  0x83   : > { %s1962_s30 = scalar_select %p39_p9, %s1663_s23, %s2173_s5  }
  0x84   : > { %p1521_p11 = pneg %p1955_p2  ;;  %s1524_s21 = scalar_lea.hbm %s2125_s2, 5120 }
  0x85   : > { %p1525_p0 = scmp.lt.u32.totalorder %s1942_s1, %s2125_s2  ;;  %p1526_p3 = scmp.lt.u32.totalorder %s1524_s21, %s1519_s16 }
  0x86   : > { %p1522_p1 = pnand %p1521_p11, %p1520_p7  ;;  %p1528_p8 = scmp.lt.u32.totalorder %s1519_s16, %s1942_s1 }
  0x87   : > { %p1527_p4 = por %p1526_p3, %p1525_p0 }
  0x88   : > { %p1523_p6 = pneg %p1522_p1 }
  0x89   : > { %p1529_p5 = por %p1528_p8, %p1527_p4 }
  0x8b   : > { %p1530_p12 = pnand %p1529_p5, %p1523_p6 }
  0x8d   : > { %1533 = shalt.err (!%p1530_p12)
}
  0x8e   : > { %s1534_s5 = scalar_lea.vmem %s1951_s3, 1024  ;;  %s1692_s12 = smov [#allocation8]  }
  0x8f   : > { %p1535_p13 = scmp.ne.s32.totalorder %s1951_s3, %s1534_s5  ;;  %s1539_s25 = sshll.u32 %s1692_s12, 4  ;;  %s1540_s25 = int_to_ptr.vmem [resolvable:$false] %s1539_s25 }
  0x90   : > { %s1541_s0 = scalar_lea.vmem %s1540_s25, 2048  ;;  %p1542_p7 = scmp.lt.s32.totalorder %s1951_s3, %s1540_s25 }
  0x91   : > { %p1537_p9 = pnand %p1535_p13, %p1521_p11  ;;  %p1543_p1 = scmp.lt.s32.totalorder %s1541_s0, %s1534_s5 }
  0x93   : > { %p1538_p10 = pneg %p1537_p9  ;;  %p1544_p0 = por %p1543_p1, %p1542_p7 }
  0x95   : > { %p1545_p3 = pnand %p1544_p0, %p1538_p10 }
  0x97   : > { %1548 = shalt.err (!%p1545_p3)
}
  0x98   : > { %1282 = dma.hbm_to_vmem [thread:$0]  (!%p1955_p2), %s1942_s1, 1024, %s1951_s3, %s1873_s10, %s2168_s11, %s2168_s11, %s2167_s13  }
  0x99   : > { %p2174_p11 = scmp.ne.s32.totalorder %s2156_s9, 0 }
  0x9a   : > { %s269_s16 = sand.u32 (!%p2174_p11), 1, %s1780_s29   ;;  %s271_s21 = sand.u32 (!%p2174_p11), 1, %s1659_s22  }
  0x9b   : > { %267 = sbr.rel (%p2174_p11) target bundleno = 944 (0x3b0), region = 40  ;;  %s1038_s18 = sshll.u32 (!%p2174_p11), %s271_s21, 6 }
  0x9c   : > { %s270_s5 = scalar_lea.sflag (!%p2174_p11), [#allocation4], %s269_s16  ;;  %s1999_s15 = scalar_lea.vmem (!%p2174_p11), [#allocation3], %s1038_s18 }
  0x9d   : > { %p2175_p6 = scmp.ne.s32.totalorder (!%p2174_p11), %s2152_s6, 0 }
  0xa2   : > { %1622 = dma.done.wait (%p2175_p6), %s270_s5, 1024  }
  0xa3   : > { %1624 = vsyncadd (%p2175_p6), %s270_s5, 4294966272  ;;  %p2176_p2 = scmp.eq.s32.totalorder %s1780_s29, 0 }
  0xa5   : > { %1626 = dma.done.wait (%p2176_p2), [#allocation7], 2048   ;;  %p2177_p4 = pmov %p2176_p2 }
  0xa6   : > { %s284_s3 = sand.u32 1, %s1647_s19   ;;  %p2178_p8 = scmp.ne.s32.totalorder %s2153_s7, 0 }
  0xa7   : > { %1628 = vsyncadd (%p2177_p4), [#allocation7], 4294965248  ;;  %s1040_s9 = sshll.u32 %s284_s3, 6 }
  0xa8   : > { %s2010_s10 = scalar_lea.vmem [#allocation8], %s1040_s9 }
  0xa9   : > { %1630 = dma.done.wait (%p2178_p8), %s270_s5, 1024  }
  0xaa   : > { %1632 = vsyncadd (%p2178_p8), %s270_s5, 4294966272  ;;  %p2179_p5 = pmov %p2176_p2 }
  0xab   : > { %p2180_p12 = pmov %p2176_p2 }
  0xac   : > { %1634 = dma.done.wait (%p2179_p5), [#allocation7], 1024  }
  0xad   : > { %1636 = vsyncadd (%p2180_p12), [#allocation7], 4294966272  ;;  %s2020_s6 = scalar_lea.vmem [#allocation10], %s1038_s18  ;;  %p1043_p13 = scmp.ne.s32.totalorder %s1667_s24, 0 }
  0xae   : > { %v1389_v0 = vld [vmem:[#allocation6 + $0x40] sm:$0xff] (!%p1043_p13)   ;;  %v1391_v2 = vld [vmem:[#allocation6 + $0x48] sm:$0xff] (!%p1043_p13)   ;;  %v1393_v4 = vld [vmem:[#allocation6 + $0x50] sm:$0xff] (!%p1043_p13)  }
  0xaf   : > { %328 = sbr.rel (%p1043_p13) target bundleno = 437 (0x1b5), region = 60  ;;  %v1390_v1 = vld [vmem:[#allocation6] sm:$0xff] (!%p1043_p13)   ;;  %1095 = vmatprep.subr.bf16.mxu0 (!%p1043_p13), %v1389_v0  ;;  %1207 = vmatprep.subr.bf16.mxu1 (!%p1043_p13), %v1389_v0  ;;  %v1392_v3 = vld [vmem:[#allocation6 + $0x8] sm:$0xff] (!%p1043_p13)   ;;  %v1394_v5 = vld [vmem:[#allocation6 + $0x10] sm:$0xff] (!%p1043_p13)  }
  0xb0   : > { %1096 = vmatpush3.bf16.msra.mxu0 (!%p1043_p13), %v1390_v1  ;;  %1215 = vmatpush3.bf16.msra.mxu1 (!%p1043_p13), %v1390_v1  ;;  %v1395_v6 = vld [vmem:[#allocation6 + $0x58] sm:$0xff] (!%p1043_p13)   ;;  %v1397_v8 = vld [vmem:[#allocation6 + $0x60] sm:$0xff] (!%p1043_p13)   ;;  %v1399_v10 = vld [vmem:[#allocation6 + $0x68] sm:$0xff] (!%p1043_p13)  }
  0xb1   : > { %1097 = vmatprep.subr.bf16.mxu0 (!%p1043_p13), %v1391_v2  ;;  %1208 = vmatprep.subr.bf16.mxu1 (!%p1043_p13), %v1391_v2  ;;  %v1396_v7 = vld [vmem:[#allocation6 + $0x18] sm:$0xff] (!%p1043_p13)   ;;  %v1398_v9 = vld [vmem:[#allocation6 + $0x20] sm:$0xff] (!%p1043_p13)   ;;  %v1400_v13 = vld [vmem:[#allocation6 + $0x28] sm:$0xff] (!%p1043_p13)  }
  0xb2   : > { %v1407_v11 = vld [vmem:[%s1999_s15 + $0x4] ss:$8 sps:$4 sm:$0xff] (!%p1043_p13)   ;;  %v1401_v14 = vld [vmem:[#allocation6 + $0x70] sm:$0xff] (!%p1043_p13)   ;;  %v1403_v16 = vld [vmem:[#allocation6 + $0x78] sm:$0xff] (!%p1043_p13)  }
  0xb3   : > { %v1410_v12 = vld [vmem:[%s1999_s15 + $0x24] ss:$8 sps:$4 sm:$0xff] (!%p1043_p13)   ;;  %537 = vmatprep.mubr.bf16.mxu0 (!%p1043_p13), %v1407_v11  ;;  %v1402_v15 = vld [vmem:[#allocation6 + $0x30] sm:$0xff] (!%p1043_p13)   ;;  %v1404_v17 = vld [vmem:[#allocation6 + $0x38] sm:$0xff] (!%p1043_p13)  }
  0xb4   : > { %1098 = vmatpush3.bf16.msra.mxu0 (!%p1043_p13), %v1392_v3  ;;  %1216 = vmatpush3.bf16.msra.mxu1 (!%p1043_p13), %v1392_v3  ;;  %v1405_v18 = vld [vmem:[%s1999_s15] ss:$8 sps:$4 sm:$0xff] (!%p1043_p13)   ;;  %v1411_v20 = vld [vmem:[%s1999_s15 + $0x14] ss:$8 sps:$4 sm:$0xff] (!%p1043_p13)   ;;  %v1415_v22 = vld [vmem:[%s1999_s15 + $0x10] ss:$8 sps:$4 sm:$0xff] (!%p1043_p13)  }
  0xb5   : > { %1099 = vmatprep.subr.bf16.mxu0 (!%p1043_p13), %v1393_v4  ;;  %1209 = vmatprep.subr.bf16.mxu1 (!%p1043_p13), %v1393_v4  ;;  %v1408_v19 = vld [vmem:[%s1999_s15 + $0x20] ss:$8 sps:$4 sm:$0xff] (!%p1043_p13)   ;;  %v1413_v21 = vld [vmem:[%s1999_s15 + $0x34] ss:$8 sps:$4 sm:$0xff] (!%p1043_p13)   ;;  %v1416_v23 = vld [vmem:[%s1999_s15 + $0x30] ss:$8 sps:$4 sm:$0xff] (!%p1043_p13)  }
  0xb6   : > { %553 = vmatprep.mubr.bf16.mxu1 %v1410_v12 }
  0xb8   : > { %1100 = vmatpush3.bf16.msra.mxu0 %v1394_v5  ;;  %1217 = vmatpush3.bf16.msra.mxu1 %v1394_v5 }
  0xb9   : > { %1101 = vmatprep.subr.bf16.mxu0 %v1395_v6  ;;  %1210 = vmatprep.subr.bf16.mxu1 %v1395_v6 }
  0xbc   : > { %1102 = vmatpush3.bf16.msra.mxu0 %v1396_v7  ;;  %1218 = vmatpush3.bf16.msra.mxu1 %v1396_v7 }
  0xbd   : > { %1103 = vmatprep.subr.bf16.mxu0 %v1397_v8  ;;  %1211 = vmatprep.subr.bf16.mxu1 %v1397_v8 }
  0xc0   : > { %1104 = vmatpush3.bf16.msra.mxu0 %v1398_v9  ;;  %1219 = vmatpush3.bf16.msra.mxu1 %v1398_v9 }
  0xc1   : > { %1105 = vmatprep.subr.bf16.mxu0 %v1399_v10  ;;  %1212 = vmatprep.subr.bf16.mxu1 %v1399_v10 }
  0xc4   : > { %1106 = vmatpush3.bf16.msra.mxu0 %v1400_v13  ;;  %1220 = vmatpush3.bf16.msra.mxu1 %v1400_v13 }
  0xc5   : > { %1107 = vmatprep.subr.bf16.mxu0 %v1401_v14  ;;  %1213 = vmatprep.subr.bf16.mxu1 %v1401_v14 }
  0xc8   : > { %1108 = vmatpush3.bf16.msra.mxu0 %v1402_v15  ;;  %1221 = vmatpush3.bf16.msra.mxu1 %v1402_v15 }
  0xc9   : > { %1109 = vmatprep.subr.bf16.mxu0 %v1403_v16  ;;  %1214 = vmatprep.subr.bf16.mxu1 %v1403_v16 }
  0xcc   : > { %1110 = vmatpush3.bf16.msra.mxu0 %v1404_v17  ;;  %1222 = vmatpush3.bf16.msra.mxu1 %v1404_v17 }
  0xcf   : > { %538 = vmatmul.mubr.bf16.vlgmr.msra.gmra.mrb[0].mxu0 %v1405_v18  ;;  %554 = vmatmul.mubr.bf16.vlgmr.msra.gmra.mrb[0].mxu1 %v1408_v19 }
  0xd0   : > { %545 = vmatprep.mubr.bf16.mxu0 %v1411_v20  ;;  %561 = vmatprep.mubr.bf16.mxu1 %v1413_v21 }
  0xd7   : > { %546 = vmatmul.mubr.bf16.gmra.mrb[4].mxu0 %v1415_v22  ;;  %562 = vmatmul.mubr.bf16.gmra.mrb[4].mxu1 %v1416_v23 }
 0x1a2   : > { %v1111_v24 = vpop.f32.mrb[0].mxu0  ;;  %v1123_v25 = vpop.f32.mrb[0].mxu1 }
 0x1a3   : > { %v1112_v26 = vpop.f32.mrb[1].mxu0  ;;  %v1124_v27 = vpop.f32.mrb[1].mxu1 }
 0x1a4   : > { %v1113_v28 = vadd.f32 %v1112_v26, %v1111_v24  ;;  %v1125_v29 = vadd.f32 %v1124_v27, %v1123_v25  ;;  %v1114_v30 = vpop.f32.mrb[2].mxu0  ;;  %v1126_v31 = vpop.f32.mrb[2].mxu1 }
 0x1a5   : > { %v1115_v32 = vpop.f32.mrb[3].mxu0  ;;  %v1127_v33 = vpop.f32.mrb[3].mxu1 }
 0x1a6   : > { %v1116_v34 = vadd.f32 %v1115_v32, %v1114_v30  ;;  %v1128_v35 = vadd.f32 %v1127_v33, %v1126_v31  ;;  %v570_v36 = vmax.f32 %v1113_v28, 0.0  ;;  %v574_v37 = vmax.f32 %v1125_v29, 0.0 }
 0x1a8   : > { %v571_v38 = vmax.f32 %v1116_v34, 0.0  ;;  %v575_v39 = vmax.f32 %v1128_v35, 0.0 }
 0x1aa   : > { %v578_v40 = vpack.c.bf16 %v571_v38, %v570_v36  ;;  %v580_v41 = vpack.c.bf16 %v575_v39, %v574_v37  ;;  %v1117_v42 = vpop.f32.mrb[4].mxu0  ;;  %v1129_v43 = vpop.f32.mrb[4].mxu1 }
 0x1ab   : > { %v1118_v44 = vpop.f32.mrb[5].mxu0  ;;  %v1130_v45 = vpop.f32.mrb[5].mxu1 }
 0x1ac   : > { %582 = vst [vmem:[#allocation2] sm:$0xff] %v578_v40  ;;  %584 = vst [vmem:[#allocation2 + $0x10] sm:$0xff] %v580_v41  ;;  %v1119_v46 = vadd.f32 %v1118_v44, %v1117_v42  ;;  %v1131_v47 = vadd.f32 %v1130_v45, %v1129_v43  ;;  %v1120_v48 = vpop.f32.mrb[6].mxu0  ;;  %v1132_v49 = vpop.f32.mrb[6].mxu1 }
 0x1ad   : > { %v1121_v50 = vpop.f32.mrb[7].mxu0  ;;  %v1133_v51 = vpop.f32.mrb[7].mxu1 }
 0x1ae   : > { %v1122_v52 = vadd.f32 %v1121_v50, %v1120_v48  ;;  %v1134_v53 = vadd.f32 %v1133_v51, %v1132_v49  ;;  %v572_v54 = vmax.f32 %v1119_v46, 0.0  ;;  %v576_v55 = vmax.f32 %v1131_v47, 0.0 }
 0x1b0   : > { %v573_v56 = vmax.f32 %v1122_v52, 0.0  ;;  %v577_v57 = vmax.f32 %v1134_v53, 0.0 }
 0x1b2   : > { %v579_v58 = vpack.c.bf16 %v573_v56, %v572_v54  ;;  %v581_v59 = vpack.c.bf16 %v577_v57, %v576_v55 }
 0x1b4   : > { %583 = vst [vmem:[#allocation2 + $0x8] sm:$0xff] %v579_v58  ;;  %585 = vst [vmem:[#allocation2 + $0x18] sm:$0xff] %v581_v59 }
 0x1b5 PF: > { %v1417_v60 = vld [vmem:[%s2010_s10] sm:$0xff]   ;;  %v1418_v61 = vld [vmem:[%s2010_s10 + $0x8] sm:$0xff]   ;;  %v1419_v62 = vld [vmem:[%s2010_s10 + $0x10] sm:$0xff]   ;;  %p1076_p9 = scmp.ne.s32.totalorder %s1667_s24, 4 }
 0x1b6   : > { %1159 = vmatprep.subr.bf16.mxu0 %v1417_v60  ;;  %1223 = vmatprep.subr.bf16.mxu1 %v1417_v60  ;;  %v1420_v63 = vld [vmem:[%s2010_s10 + $0x18] sm:$0xff]   ;;  %v586_v0 = vld [vmem:[#allocation2] sm:$0xff]  ;;  %v588_v1 = vld [vmem:[#allocation2 + $0x10] sm:$0xff] }
 0x1b7   : > { %1160 = vmatpush3.bf16.msra.mxu0 %v1417_v60  ;;  %1231 = vmatpush3.bf16.msra.mxu1 %v1417_v60  ;;  %v1421_v2 = vld [vmem:[%s2010_s10 + $0x20] sm:$0xff]   ;;  %v1422_v3 = vld [vmem:[%s2010_s10 + $0x28] sm:$0xff]   ;;  %v1423_v4 = vld [vmem:[%s2010_s10 + $0x30] sm:$0xff]  }
 0x1b8   : > { %1161 = vmatprep.subr.bf16.mxu0 %v1418_v61  ;;  %1224 = vmatprep.subr.bf16.mxu1 %v1418_v61  ;;  %v1424_v5 = vld [vmem:[%s2010_s10 + $0x38] sm:$0xff]   ;;  %v1425_v28 = vld [vmem:[#allocation9] sm:$0xff] (!%p1076_p9)   ;;  %v1426_v29 = vld [vmem:[#allocation9 + $0x8] sm:$0xff] (!%p1076_p9)  }
 0x1b9   : > { %1175 = vmatprep.mubr.bf16.mxu0 %v586_v0  ;;  %1179 = vmatprep.mubr.bf16.mxu1 %v588_v1  ;;  %v1427_v30 = vld [vmem:[#allocation9 + $0x10] sm:$0xff] (!%p1076_p9)   ;;  %v1428_v31 = vld [vmem:[#allocation9 + $0x18] sm:$0xff] (!%p1076_p9)   ;;  %v1429_v34 = vld [vmem:[#allocation9 + $0x20] sm:$0xff] (!%p1076_p9)  }
 0x1ba   : > { %v1430_v35 = vld [vmem:[#allocation9 + $0x28] sm:$0xff] (!%p1076_p9)   ;;  %v1431_v36 = vld [vmem:[#allocation9 + $0x30] sm:$0xff] (!%p1076_p9)   ;;  %v1432_v37 = vld [vmem:[#allocation9 + $0x38] sm:$0xff] (!%p1076_p9)  }
 0x1bb   : > { %1162 = vmatpush3.bf16.msra.mxu0 %v1418_v61  ;;  %1232 = vmatpush3.bf16.msra.mxu1 %v1418_v61  ;;  %v587_v6 = vld [vmem:[#allocation2 + $0x8] sm:$0xff]  ;;  %v589_v7 = vld [vmem:[#allocation2 + $0x18] sm:$0xff]  ;;  %v1077_v40 = vld [vmem:[%s2127_s4] ss:$0 sm:$0xff] (!%p1076_p9) }
 0x1bc   : > { %1163 = vmatprep.subr.bf16.mxu0 %v1419_v62  ;;  %1225 = vmatprep.subr.bf16.mxu1 %v1419_v62 }
 0x1bf   : > { %1164 = vmatpush3.bf16.msra.mxu0 %v1419_v62  ;;  %1233 = vmatpush3.bf16.msra.mxu1 %v1419_v62 }
 0x1c0   : > { %1165 = vmatprep.subr.bf16.mxu0 %v1420_v63  ;;  %1226 = vmatprep.subr.bf16.mxu1 %v1420_v63 }
 0x1c3   : > { %1166 = vmatpush3.bf16.msra.mxu0 %v1420_v63  ;;  %1234 = vmatpush3.bf16.msra.mxu1 %v1420_v63 }
 0x1c4   : > { %1167 = vmatprep.subr.bf16.mxu0 %v1421_v2  ;;  %1227 = vmatprep.subr.bf16.mxu1 %v1421_v2 }
 0x1c7   : > { %1168 = vmatpush3.bf16.msra.mxu0 %v1421_v2  ;;  %1235 = vmatpush3.bf16.msra.mxu1 %v1421_v2 }
 0x1c8   : > { %1169 = vmatprep.subr.bf16.mxu0 %v1422_v3  ;;  %1228 = vmatprep.subr.bf16.mxu1 %v1422_v3 }
 0x1cb   : > { %1170 = vmatpush3.bf16.msra.mxu0 %v1422_v3  ;;  %1236 = vmatpush3.bf16.msra.mxu1 %v1422_v3 }
 0x1cc   : > { %1171 = vmatprep.subr.bf16.mxu0 %v1423_v4  ;;  %1229 = vmatprep.subr.bf16.mxu1 %v1423_v4 }
 0x1cf   : > { %1172 = vmatpush3.bf16.msra.mxu0 %v1423_v4  ;;  %1237 = vmatpush3.bf16.msra.mxu1 %v1423_v4 }
 0x1d0   : > { %1173 = vmatprep.subr.bf16.mxu0 %v1424_v5  ;;  %1230 = vmatprep.subr.bf16.mxu1 %v1424_v5 }
 0x1d3   : > { %1174 = vmatpush3.bf16.msra.mxu0 %v1424_v5  ;;  %1238 = vmatpush3.bf16.msra.mxu1 %v1424_v5 }
 0x1d4   : > { %1183 = vmatprep.subr.bf16.mxu0 (!%p1076_p9), %v1425_v28  ;;  %1239 = vmatprep.subr.bf16.mxu1 (!%p1076_p9), %v1425_v28 }
 0x1d6   : > { %1176 = vmatmul.mubr.bf16.vlgmr.msra.gmra.mrb[0].mxu0 %v587_v6  ;;  %1180 = vmatmul.mubr.bf16.vlgmr.msra.gmra.mrb[0].mxu1 %v589_v7 }
 0x1d7   : > { %1184 = vmatpush3.bf16.msra.mxu0 (!%p1076_p9), %v1425_v28  ;;  %1247 = vmatpush3.bf16.msra.mxu1 (!%p1076_p9), %v1425_v28 }
 0x1d8   : > { %1185 = vmatprep.subr.bf16.mxu0 (!%p1076_p9), %v1426_v29  ;;  %1240 = vmatprep.subr.bf16.mxu1 (!%p1076_p9), %v1426_v29 }
 0x1db   : > { %1186 = vmatpush3.bf16.msra.mxu0 (!%p1076_p9), %v1426_v29  ;;  %1248 = vmatpush3.bf16.msra.mxu1 (!%p1076_p9), %v1426_v29 }
 0x1dc   : > { %1187 = vmatprep.subr.bf16.mxu0 (!%p1076_p9), %v1427_v30  ;;  %1241 = vmatprep.subr.bf16.mxu1 (!%p1076_p9), %v1427_v30 }
 0x1df   : > { %1188 = vmatpush3.bf16.msra.mxu0 (!%p1076_p9), %v1427_v30  ;;  %1249 = vmatpush3.bf16.msra.mxu1 (!%p1076_p9), %v1427_v30 }
 0x1e0   : > { %1189 = vmatprep.subr.bf16.mxu0 (!%p1076_p9), %v1428_v31  ;;  %1242 = vmatprep.subr.bf16.mxu1 (!%p1076_p9), %v1428_v31 }
 0x1e3   : > { %1190 = vmatpush3.bf16.msra.mxu0 (!%p1076_p9), %v1428_v31  ;;  %1250 = vmatpush3.bf16.msra.mxu1 (!%p1076_p9), %v1428_v31 }
 0x1e4   : > { %1191 = vmatprep.subr.bf16.mxu0 (!%p1076_p9), %v1429_v34  ;;  %1243 = vmatprep.subr.bf16.mxu1 (!%p1076_p9), %v1429_v34 }
 0x1e7   : > { %1192 = vmatpush3.bf16.msra.mxu0 (!%p1076_p9), %v1429_v34  ;;  %1251 = vmatpush3.bf16.msra.mxu1 (!%p1076_p9), %v1429_v34 }
 0x1e8   : > { %1193 = vmatprep.subr.bf16.mxu0 (!%p1076_p9), %v1430_v35  ;;  %1244 = vmatprep.subr.bf16.mxu1 (!%p1076_p9), %v1430_v35 }
 0x1eb   : > { %1194 = vmatpush3.bf16.msra.mxu0 (!%p1076_p9), %v1430_v35  ;;  %1252 = vmatpush3.bf16.msra.mxu1 (!%p1076_p9), %v1430_v35 }
 0x1ec   : > { %1195 = vmatprep.subr.bf16.mxu0 (!%p1076_p9), %v1431_v36  ;;  %1245 = vmatprep.subr.bf16.mxu1 (!%p1076_p9), %v1431_v36 }
 0x1ef   : > { %1196 = vmatpush3.bf16.msra.mxu0 (!%p1076_p9), %v1431_v36  ;;  %1253 = vmatpush3.bf16.msra.mxu1 (!%p1076_p9), %v1431_v36 }
 0x1f0   : > { %1197 = vmatprep.subr.bf16.mxu0 (!%p1076_p9), %v1432_v37  ;;  %1246 = vmatprep.subr.bf16.mxu1 (!%p1076_p9), %v1432_v37 }
 0x1f3   : > { %1198 = vmatpush3.bf16.msra.mxu0 (!%p1076_p9), %v1432_v37  ;;  %1254 = vmatpush3.bf16.msra.mxu1 (!%p1076_p9), %v1432_v37 }
 0x2a9   : > { %v1177_v8 = vpop.f32.mrb[0].mxu0  ;;  %v1181_v9 = vpop.f32.mrb[0].mxu1 }
 0x2aa   : > { %v688_v10 = vpop.f32.mrb[1].mxu0  ;;  %v704_v11 = vpop.f32.mrb[1].mxu1  ;;  %v721_v14 = vmax.f32 %v1177_v8, 0.0  ;;  %v725_v15 = vmax.f32 %v1181_v9, 0.0 }
 0x2ab   : > { %v1178_v12 = vpop.f32.mrb[2].mxu0  ;;  %v1182_v13 = vpop.f32.mrb[2].mxu1  ;;  %v719_v20 = vmax.f32 %v688_v10, 0.0  ;;  %v723_v21 = vmax.f32 %v704_v11, 0.0  ;;  %738 = sbr.rel (%p1076_p9) target bundleno = 916 (0x394), region = 64 }
 0x2ac   : > { %v722_v16 = vmax.f32 %v1178_v12, 0.0  ;;  %v726_v17 = vmax.f32 %v1182_v13, 0.0  ;;  %v691_v18 = vpop.f32.mrb[3].mxu0  ;;  %v707_v19 = vpop.f32.mrb[3].mxu1 }
 0x2ad   : > { %v720_v22 = vmax.f32 %v691_v18, 0.0  ;;  %v724_v23 = vmax.f32 %v707_v19, 0.0 }
 0x2ae   : > { %v728_v24 = vpack.c.bf16 %v722_v16, %v721_v14  ;;  %v730_v25 = vpack.c.bf16 %v726_v17, %v725_v15 }
 0x2af   : > { %v727_v26 = vpack.c.bf16 %v720_v22, %v719_v20  ;;  %v729_v27 = vpack.c.bf16 %v724_v23, %v723_v21 }
 0x2b0   : > { %732 = vst [vmem:[#allocation2 + $0x8] sm:$0xff] %v728_v24  ;;  %734 = vst [vmem:[#allocation2 + $0x18] sm:$0xff] %v730_v25 }
 0x2b1   : > { %731 = vst [vmem:[#allocation2] sm:$0xff] %v727_v26  ;;  %733 = vst [vmem:[#allocation2 + $0x10] sm:$0xff] %v729_v27 }
 0x2b7   : > { %v740_v38 = vld [vmem:[#allocation2 + $0x8] sm:$0xff]  ;;  %v742_v39 = vld [vmem:[#allocation2 + $0x18] sm:$0xff] }
 0x2b8   : > { %v739_v32 = vld [vmem:[#allocation2] sm:$0xff]  ;;  %v741_v33 = vld [vmem:[#allocation2 + $0x10] sm:$0xff] }
 0x2b9   : > { %1199 = vmatprep.mubr.bf16.mxu0 %v739_v32  ;;  %1203 = vmatprep.mubr.bf16.mxu1 %v741_v33 }
 0x2ba   : > { %1200 = vmatmul.mubr.bf16.vlgmr.msra.gmra.mrb[0].mxu0 %v740_v38  ;;  %1204 = vmatmul.mubr.bf16.vlgmr.msra.gmra.mrb[0].mxu1 %v742_v39 }
 0x38d   : > { %v1201_v41 = vpop.f32.mrb[0].mxu0  ;;  %v1205_v42 = vpop.f32.mrb[0].mxu1 }
 0x38e   : > { %v857_v43 = vadd.f32 %v1201_v41, %v1077_v40  ;;  %v873_v44 = vadd.f32 %v1205_v42, %v1077_v40  ;;  %v848_v45 = vpop.f32.mrb[1].mxu0  ;;  %v864_v46 = vpop.f32.mrb[1].mxu1 }
 0x38f   : > { %v849_v47 = vadd.f32 %v1077_v40, %v848_v45  ;;  %v865_v48 = vadd.f32 %v1077_v40, %v864_v46  ;;  %v1202_v49 = vpop.f32.mrb[2].mxu0  ;;  %v1206_v50 = vpop.f32.mrb[2].mxu1 }
 0x390   : > { %881 = vst [vmem:[%s2020_s6 + $0x10] sm:$0xff] %v857_v43  ;;  %885 = vst [vmem:[%s2020_s6 + $0x30] sm:$0xff] %v873_v44  ;;  %v860_v51 = vadd.f32 %v1202_v49, %v1077_v40  ;;  %v876_v52 = vadd.f32 %v1206_v50, %v1077_v40  ;;  %v851_v53 = vpop.f32.mrb[3].mxu0  ;;  %v867_v54 = vpop.f32.mrb[3].mxu1 }
 0x391   : > { %879 = vst [vmem:[%s2020_s6] sm:$0xff] %v849_v47  ;;  %883 = vst [vmem:[%s2020_s6 + $0x20] sm:$0xff] %v865_v48  ;;  %v852_v55 = vadd.f32 %v1077_v40, %v851_v53  ;;  %v868_v56 = vadd.f32 %v1077_v40, %v867_v54 }
 0x392   : > { %882 = vst [vmem:[%s2020_s6 + $0x18] sm:$0xff] %v860_v51  ;;  %886 = vst [vmem:[%s2020_s6 + $0x38] sm:$0xff] %v876_v52 }
 0x393   : > { %880 = vst [vmem:[%s2020_s6 + $0x8] sm:$0xff] %v852_v55  ;;  %884 = vst [vmem:[%s2020_s6 + $0x28] sm:$0xff] %v868_v56 }
 0x394 PF: > { %s2181_s7 = sld [smem:[#allocation17_spill]]  ;;  %s2182_s13 = sld [smem:[#allocation19_spill]] }
 0x395   : > { %s2183_s25 = sld [smem:[#allocation23_spill]]  ;;  %s901_s18 = sshll.u32 %s2020_s6, 4  ;;  %s2058_s18 = int_to_ptr.vmem [resolvable:$true] %s901_s18 }
 0x396   : > { %s2062_s5 = scalar_lea.sflag [#allocation5], %s271_s21  ;;  %s1549_s15 = scalar_lea.vmem %s2058_s18, 1024 }
 0x397   : > { %p1550_p10 = scmp.ne.s32.totalorder %s2058_s18, %s1549_s15  ;;  %s1693_s3 = smov [#allocation10]  }
 0x398   : > { %s1553_s9 = sshll.u32 %s1693_s3, 4  ;;  %s1554_s9 = int_to_ptr.vmem [resolvable:$false] %s1553_s9 }
 0x399   : > { %s1555_s10 = scalar_lea.vmem %s1554_s9, 2048  ;;  %p1556_p3 = scmp.lt.s32.totalorder %s2058_s18, %s1554_s9 }
 0x39a   : > { %s1094_s11 = sshll.u32 %s2181_s7, 10  ;;  %p2185_p7 = scmp.ne.s32.totalorder %s2182_s13, 0 }
 0x39b   : > { %s2184_s0 = smov %s2183_s25  ;;  %s2055_s16 = scalar_lea.hbm %s2183_s25, %s1094_s11 }
 0x39c   : > { %p1551_p1 = pnand %p1550_p10, %p2185_p7  ;;  %p1557_p11 = scmp.lt.s32.totalorder %s1555_s10, %s1549_s15 }
 0x39e   : > { %p1552_p0 = pneg %p1551_p1  ;;  %p1558_p6 = por %p1557_p11, %p1556_p3 }
 0x3a0   : > { %p1559_p2 = pnand %p1558_p6, %p1552_p0 }
 0x3a2   : > { %1562 = shalt.err (!%p1559_p2)
}
 0x3a3   : > { %s1563_s21 = scalar_lea.hbm %s2055_s16, 1024  ;;  %s1567_s29 = scalar_lea.hbm %s2184_s0, 2048 }
 0x3a4   : > { %p1564_p4 = scmp.ne.s32.totalorder %s2055_s16, %s1563_s21  ;;  %p1568_p12 = scmp.lt.u32.totalorder %s2055_s16, %s2184_s0 }
 0x3a5   : > { %p1569_p13 = scmp.lt.u32.totalorder %s1567_s29, %s1563_s21  ;;  %p1571_p10 = scmp.lt.u32.totalorder %s1563_s21, %s2055_s16 }
 0x3a6   : > { %p1565_p8 = pnand %p1564_p4, %p2185_p7 }
 0x3a7   : > { %p1570_p9 = por %p1569_p13, %p1568_p12 }
 0x3a8   : > { %p1566_p5 = pneg %p1565_p8 }
 0x3a9   : > { %p1572_p1 = por %p1571_p10, %p1570_p9 }
 0x3ab   : > { %p1573_p0 = pnand %p1572_p1, %p1566_p5 }
 0x3ad   : > { %1576 = shalt.err (!%p1573_p0)
}
 0x3ae   : > { %s1694_s1 = smov 128   ;;  %s1695_s12 = smov 8  }
 0x3af   : > { %1267 = dma.vmem_to_hbm [thread:$0]  (%p2185_p7), %s2058_s18, 1024, %s2055_s16, %s2062_s5, %s1694_s1, %s1694_s1, %s1695_s12  }
 0x3b0 PF: > { %s2186_s25 = sld [smem:[#allocation16_spill]]  ;;  %s2187_s15 = sld [smem:[#allocation18_spill]] }
 0x3b1   : > { %p1292_p3 = scmp.ge.s32.totalorder %s1683_s28, 2 }
 0x3b6   : > { %s916_s3 = sand.u32 1, %s2186_s25   ;;  %p2188_p11 = scmp.ne.s32.totalorder %s2187_s15, 0 }
 0x3b7   : > { %s917_s9 = scalar_lea.sflag [#allocation5], %s916_s3 }
 0x3b8   : > { %p1284_p6 = pnand %p1292_p3, %p2188_p11 }
 0x3ba   : > { %1638 = dma.done.wait (!%p1284_p6), %s917_s9, 1024  }
 0x3bb   : > { %1640 = vsyncadd (!%p1284_p6), %s917_s9, 4294966272  ;;  %s22_s28 = sadd.s32 1, %s1683_s28   ;;  %s2189_s18 = smov %s1647_s19 }
 0x3bc   : > { %p19_p2 = scmp.ge.s32.totalorder %s22_s28, 12   ;;  %s2190_s19 = smov %s1651_s20 }
 0x3bd   : > { %s2191_s20 = smov %s1947_s17  ;;  %s2192_s21 = smov %s1659_s22 }
 0x3be   : > { %s2193_s22 = smov %s1663_s23  ;;  %s2194_s23 = smov %s1962_s30 }
 0x3bf   : > { %s2195_s24 = smov %s1675_s26  ;;  %s2196_s25 = smov %s1679_s27 }
 0x3c0   : > { %s2197_s26 = smov %s2200_s14  ;;  %s2198_s27 = smov %s2204_s8 }
 0x3c1   :  { %21 = sbr.rel (!%p19_p2) target bundleno = 15 (0xf), region = 112 }
 0x3c8   :  { %922 = vsyncpa [#allocation4], 1 }
 0x3c9   :  { %924 = vsyncpa [#allocation4 + $0x1], 1 }
 0x3ca   :  { %925 = vsyncpa [#allocation7], 1 }
 0x3cb   :  { %926 = vsyncpa [#allocation5], 1 }
 0x3cc   :  { %928 = vsyncpa [#allocation5 + $0x1], 1 }

</bundles_post_ra>
